<compile_context>
chip_gen: v7x
topology: tpu7x:2x2x1
jax: 0.10.0
libtpu: 0.0.40
codegen_flags: <defaults>
</compile_context>

<pallas_src>
import jax
import jax.numpy as jnp
from jax.experimental import pallas as pl
from jax.experimental.pallas import tpu as pltpu

LANE = 128  # TPU lane width; padded hidden width.


def _round_up(x, m):
    return (x + m - 1) // m * m


def make_value1d_kernel(num_hidden):
    """Kernel ref order: x, (w0,b0), ..., (w_{H-1},b_{H-1}), w_head, b_head, out."""

    def kernel(*refs):
        x_ref = refs[0]
        w_head_ref = refs[1 + 2 * num_hidden]   # f32 [1, 128]
        b_head_ref = refs[2 + 2 * num_hidden]   # f32 [1, 1]
        o_ref = refs[-1]                        # f32 [tb, 1]

        h = x_ref[...]                          # f32 [tb, in]
        for i in range(num_hidden):
            w = refs[1 + 2 * i][...]            # bf16 [in_p, 128] (lane-aligned)
            b = refs[2 + 2 * i][...]            # f32  [1, 128]
            # bf16 MXU matmul, f32 accumulate; bias + ReLU in f32 on the VPU.
            h = jnp.dot(h.astype(jnp.bfloat16), w,
                        preferred_element_type=jnp.float32)
            h = jnp.maximum(h + b, 0.0)

        # Value head: VPU broadcast-multiply + XLU lane reduce (no wasted MXU
        # pass; only column 0 of the old padded head output was real).
        w_head = w_head_ref[...]                # f32 [1, 128]
        v = jnp.sum(h * w_head, axis=-1, keepdims=True) + b_head_ref[...]
        o_ref[...] = v.astype(o_ref.dtype)      # compact [tb, 1] store

    return kernel


def pad_params(params):
    """Lane-align and dtype-split the Linear stack.

    params: list of (W, b) with W shaped [in, out] (already transposed vs
    torch) and b shaped [out].

    Returns:
      hidden: list of (W_bf16 [in_p, 128], b_f32 [1, 128]) for every layer
              except the last (padding lanes are exact zeros; ReLU(0)=0 keeps
              the math identical to the unpadded network).
      w_head: f32 [1, 128] — transposed, zero-padded head weight column.
      b_head: f32 [1, 1]   — head bias.
    """
    hidden = []
    for idx, (w, b) in enumerate(params[:-1]):
        fan_in, fan_out = w.shape
        in_p = fan_in if idx == 0 else _round_up(fan_in, LANE)
        wp = jnp.zeros((in_p, LANE), jnp.float32).at[:fan_in, :fan_out].set(w)
        bp = jnp.zeros((1, LANE), jnp.float32).at[0, :fan_out].set(b)
        hidden.append((wp.astype(jnp.bfloat16), bp))

    w_last, b_last = params[-1]
    fan_in = w_last.shape[0]
    w_head = jnp.zeros((1, LANE), jnp.float32).at[0, :fan_in].set(w_last[:, 0])
    b_head = jnp.reshape(b_last.astype(jnp.float32), (1, 1))
    return hidden, w_head, b_head


def value1d_forward(x, params, *, block_batch=1024):
    """params: list of (W, b) with W shaped [in, out], b shaped [out]."""
    hidden_p, w_head, b_head = pad_params(params)
    num_hidden = len(hidden_p)
    batch, state = x.shape

    # Batch tile: multiple of 8 sublanes, up to block_batch rows, and capped
    # so a large batch keeps >= 4 grid steps (v7x megacore sharding + double
    # buffering) while still amortizing per-step overhead.
    tb = max(8, min(block_batch, _round_up(pl.cdiv(batch, 4), 8)))
    b_pad = _round_up(batch, tb)
    if b_pad != batch:
        x = jnp.pad(x, ((0, b_pad - batch), (0, 0)))

    flat_args = [x]
    in_specs = [pl.BlockSpec((tb, state), lambda i: (i, 0))]  # batch-tiled acts
    for wp, bp in hidden_p:
        flat_args += [wp, bp]
        in_specs += [pl.BlockSpec(wp.shape, lambda i: (0, 0)),   # resident weights
                     pl.BlockSpec(bp.shape, lambda i: (0, 0))]   # resident biases
    flat_args += [w_head, b_head]
    in_specs += [pl.BlockSpec(w_head.shape, lambda i: (0, 0)),
                 pl.BlockSpec(b_head.shape, lambda i: (0, 0))]

    out = pl.pallas_call(
        make_value1d_kernel(num_hidden),
        grid=(b_pad // tb,),
        in_specs=in_specs,
        out_specs=pl.BlockSpec((tb, 1), lambda i: (i, 0)),
        out_shape=jax.ShapeDtypeStruct((b_pad, 1), jnp.float32),
        compiler_params=pltpu.CompilerParams(
            dimension_semantics=("parallel",),      # shard batch across TCs (v7x)
            vmem_limit_bytes=32 * 1024 * 1024,      # ample; ~2-3 MB used at tb=2048
        ),
    )(*flat_args)

    return out[:batch]   # drop batch padding; head width is already 1


def init_value1d_params(key, state_size=4, hidden_size=100, layers=2):
    """Deterministic init mimicking nn.Linear default (uniform +-1/sqrt(fan_in)).

    Weights are stored already transposed as [in_features, out_features].
    """
    dims = [state_size] + [hidden_size] * (layers + 1) + [1]
    params = []
    for i in range(len(dims) - 1):
        fan_in, fan_out = dims[i], dims[i + 1]
        key, kw, kb = jax.random.split(key, 3)
        bound = 1.0 / jnp.sqrt(jnp.float32(fan_in))
        w = jax.random.uniform(kw, (fan_in, fan_out), jnp.float32, -bound, bound)
        b = jax.random.uniform(kb, (fan_out,), jnp.float32, -bound, bound)
        params.append((w, b))
    return params


def value1d_reference(x, params):
    """Plain-JAX reference mirroring kernel numerics (bf16 matmuls, f32 head)."""
    h = x
    n = len(params)
    for i, (w, b) in enumerate(params):
        if i < n - 1:
            h = jnp.dot(h.astype(jnp.bfloat16), w.astype(jnp.bfloat16),
                        preferred_element_type=jnp.float32) + b
            h = jnp.maximum(h, 0.0)
        else:
            h = jnp.dot(h, w, preferred_element_type=jnp.float32) + b
    return h


if __name__ == "__main__":
    key = jax.random.PRNGKey(0)
    state_size, hidden_size, layers = 4, 100, 2
    batch = 8

    key, kx = jax.random.split(key)
    x = jax.random.normal(kx, (batch, state_size), jnp.float32)
    params = init_value1d_params(key, state_size, hidden_size, layers)

    y = value1d_forward(x, params)
    y = jax.block_until_ready(y)

    y_ref = value1d_reference(x, params)
    assert y.shape == (batch, 1)
    assert jnp.allclose(y, y_ref, atol=2e-3, rtol=2e-3), "mismatch vs reference"

    print("KERNEL_OK")
</pallas_src>

<mosaic_0001>
module attributes {stable_mosaic.version = 11 : i64} {
  func.func @kernel(%arg0: i32, %arg1: memref<8x4xf32, #tpu.memory_space<vmem>>, %arg2: memref<4x128xbf16, #tpu.memory_space<vmem>>, %arg3: memref<1x128xf32, #tpu.memory_space<vmem>>, %arg4: memref<128x128xbf16, #tpu.memory_space<vmem>>, %arg5: memref<1x128xf32, #tpu.memory_space<vmem>>, %arg6: memref<128x128xbf16, #tpu.memory_space<vmem>>, %arg7: memref<1x128xf32, #tpu.memory_space<vmem>>, %arg8: memref<1x128xf32, #tpu.memory_space<vmem>>, %arg9: memref<1x1xf32, #tpu.memory_space<vmem>>, %arg10: memref<8x1xf32, #tpu.memory_space<vmem>>) attributes {dimension_semantics = [#tpu.dimension_semantics<parallel>], iteration_bounds = array<i64: 1>, scalar_prefetch = 0 : i64, scratch_operands = 0 : i64, tpu.core_type = #tpu.core_type<tc>, window_params = [{transform_indices = @transform_0, window_bounds = array<i64: 8, 4>}, {pipeline_mode = #tpu.pipeline_mode<synchronous>, transform_indices = @transform_1, window_bounds = array<i64: 4, 128>}, {pipeline_mode = #tpu.pipeline_mode<synchronous>, transform_indices = @transform_2, window_bounds = array<i64: 1, 128>}, {pipeline_mode = #tpu.pipeline_mode<synchronous>, transform_indices = @transform_3, window_bounds = array<i64: 128, 128>}, {pipeline_mode = #tpu.pipeline_mode<synchronous>, transform_indices = @transform_4, window_bounds = array<i64: 1, 128>}, {pipeline_mode = #tpu.pipeline_mode<synchronous>, transform_indices = @transform_5, window_bounds = array<i64: 128, 128>}, {pipeline_mode = #tpu.pipeline_mode<synchronous>, transform_indices = @transform_6, window_bounds = array<i64: 1, 128>}, {pipeline_mode = #tpu.pipeline_mode<synchronous>, transform_indices = @transform_7, window_bounds = array<i64: 1, 128>}, {pipeline_mode = #tpu.pipeline_mode<synchronous>, transform_indices = @transform_8, window_bounds = array<i64: 1, 1>}, {transform_indices = @transform_9, window_bounds = array<i64: 8, 1>}]} {
    %c0 = arith.constant 0 : index
    %c0_0 = arith.constant 0 : index
    %0 = vector.load %arg1[%c0, %c0_0] : memref<8x4xf32, #tpu.memory_space<vmem>>, vector<8x4xf32>
    %c0_1 = arith.constant 0 : index
    %c0_2 = arith.constant 0 : index
    %1 = vector.load %arg2[%c0_1, %c0_2] : memref<4x128xbf16, #tpu.memory_space<vmem>>, vector<4x128xbf16>
    %c0_3 = arith.constant 0 : index
    %c0_4 = arith.constant 0 : index
    %2 = vector.load %arg3[%c0_3, %c0_4] : memref<1x128xf32, #tpu.memory_space<vmem>>, vector<1x128xf32>
    %3 = arith.truncf %0 : vector<8x4xf32> to vector<8x4xbf16>
    %cst = arith.constant dense<0.000000e+00> : vector<8x128xf32>
    %4 = tpu.matmul %3, %1, %cst {dimension_numbers = #tpu.dot_dimension_numbers<[1], [0], [0], [1], [0, 0, 1, 1], [], []>} : vector<8x4xbf16>, vector<4x128xbf16>, vector<8x128xf32> -> vector<8x128xf32>
    %5 = vector.broadcast %2 : vector<1x128xf32> to vector<8x128xf32>
    %6 = arith.addf %4, %5 : vector<8x128xf32>
    %cst_5 = arith.constant 0.000000e+00 : f32
    %7 = vector.broadcast %cst_5 : f32 to vector<8x128xf32>
    %8 = arith.maximumf %6, %7 : vector<8x128xf32>
    %c0_6 = arith.constant 0 : index
    %c0_7 = arith.constant 0 : index
    %9 = vector.load %arg4[%c0_6, %c0_7] : memref<128x128xbf16, #tpu.memory_space<vmem>>, vector<128x128xbf16>
    %c0_8 = arith.constant 0 : index
    %c0_9 = arith.constant 0 : index
    %10 = vector.load %arg5[%c0_8, %c0_9] : memref<1x128xf32, #tpu.memory_space<vmem>>, vector<1x128xf32>
    %11 = arith.truncf %8 : vector<8x128xf32> to vector<8x128xbf16>
    %cst_10 = arith.constant dense<0.000000e+00> : vector<8x128xf32>
    %12 = tpu.matmul %11, %9, %cst_10 {dimension_numbers = #tpu.dot_dimension_numbers<[1], [0], [0], [1], [0, 0, 1, 1], [], []>} : vector<8x128xbf16>, vector<128x128xbf16>, vector<8x128xf32> -> vector<8x128xf32>
    %13 = vector.broadcast %10 : vector<1x128xf32> to vector<8x128xf32>
    %14 = arith.addf %12, %13 : vector<8x128xf32>
    %cst_11 = arith.constant 0.000000e+00 : f32
    %15 = vector.broadcast %cst_11 : f32 to vector<8x128xf32>
    %16 = arith.maximumf %14, %15 : vector<8x128xf32>
    %c0_12 = arith.constant 0 : index
    %c0_13 = arith.constant 0 : index
    %17 = vector.load %arg6[%c0_12, %c0_13] : memref<128x128xbf16, #tpu.memory_space<vmem>>, vector<128x128xbf16>
    %c0_14 = arith.constant 0 : index
    %c0_15 = arith.constant 0 : index
    %18 = vector.load %arg7[%c0_14, %c0_15] : memref<1x128xf32, #tpu.memory_space<vmem>>, vector<1x128xf32>
    %19 = arith.truncf %16 : vector<8x128xf32> to vector<8x128xbf16>
    %cst_16 = arith.constant dense<0.000000e+00> : vector<8x128xf32>
    %20 = tpu.matmul %19, %17, %cst_16 {dimension_numbers = #tpu.dot_dimension_numbers<[1], [0], [0], [1], [0, 0, 1, 1], [], []>} : vector<8x128xbf16>, vector<128x128xbf16>, vector<8x128xf32> -> vector<8x128xf32>
    %21 = vector.broadcast %18 : vector<1x128xf32> to vector<8x128xf32>
    %22 = arith.addf %20, %21 : vector<8x128xf32>
    %cst_17 = arith.constant 0.000000e+00 : f32
    %23 = vector.broadcast %cst_17 : f32 to vector<8x128xf32>
    %24 = arith.maximumf %22, %23 : vector<8x128xf32>
    %c0_18 = arith.constant 0 : index
    %c0_19 = arith.constant 0 : index
    %25 = vector.load %arg8[%c0_18, %c0_19] : memref<1x128xf32, #tpu.memory_space<vmem>>, vector<1x128xf32>
    %26 = vector.broadcast %25 : vector<1x128xf32> to vector<8x128xf32>
    %27 = arith.mulf %24, %26 : vector<8x128xf32>
    %cst_20 = arith.constant dense<0.000000e+00> : vector<8xf32>
    %28 = vector.multi_reduction <add>, %27, %cst_20 [1] : vector<8x128xf32> to vector<8xf32>
    %29 = vector.shape_cast %28 : vector<8xf32> to vector<8x1xf32>
    %c0_21 = arith.constant 0 : index
    %c0_22 = arith.constant 0 : index
    %30 = vector.load %arg9[%c0_21, %c0_22] : memref<1x1xf32, #tpu.memory_space<vmem>>, vector<1x1xf32>
    %31 = vector.broadcast %30 : vector<1x1xf32> to vector<8x1xf32>
    %32 = arith.addf %29, %31 : vector<8x1xf32>
    %c0_23 = arith.constant 0 : index
    %c0_24 = arith.constant 0 : index
    %33 = vector.load %arg10[%c0_23, %c0_24] : memref<8x1xf32, #tpu.memory_space<vmem>>, vector<8x1xf32>
    tpu.vector_store %arg10[%c0_23, %c0_24], %32 {strides = array<i32>} : memref<8x1xf32, #tpu.memory_space<vmem>>, vector<8x1xf32>,
    return
  }
  func.func @transform_0(%arg0: i32) -> (i32, i32) {
    %c0_i32 = arith.constant 0 : i32
    %c0_i32_0 = arith.constant 0 : i32
    return %arg0, %c0_i32 : i32, i32
  }
  func.func @transform_1(%arg0: i32) -> (i32, i32) {
    %c0_i32 = arith.constant 0 : i32
    %c0_i32_0 = arith.constant 0 : i32
    %c0_i32_1 = arith.constant 0 : i32
    return %c0_i32, %c0_i32_0 : i32, i32
  }
  func.func @transform_2(%arg0: i32) -> (i32, i32) {
    %c0_i32 = arith.constant 0 : i32
    %c0_i32_0 = arith.constant 0 : i32
    %c0_i32_1 = arith.constant 0 : i32
    return %c0_i32, %c0_i32_0 : i32, i32
  }
  func.func @transform_3(%arg0: i32) -> (i32, i32) {
    %c0_i32 = arith.constant 0 : i32
    %c0_i32_0 = arith.constant 0 : i32
    %c0_i32_1 = arith.constant 0 : i32
    return %c0_i32, %c0_i32_0 : i32, i32
  }
  func.func @transform_4(%arg0: i32) -> (i32, i32) {
    %c0_i32 = arith.constant 0 : i32
    %c0_i32_0 = arith.constant 0 : i32
    %c0_i32_1 = arith.constant 0 : i32
    return %c0_i32, %c0_i32_0 : i32, i32
  }
  func.func @transform_5(%arg0: i32) -> (i32, i32) {
    %c0_i32 = arith.constant 0 : i32
    %c0_i32_0 = arith.constant 0 : i32
    %c0_i32_1 = arith.constant 0 : i32
    return %c0_i32, %c0_i32_0 : i32, i32
  }
  func.func @transform_6(%arg0: i32) -> (i32, i32) {
    %c0_i32 = arith.constant 0 : i32
    %c0_i32_0 = arith.constant 0 : i32
    %c0_i32_1 = arith.constant 0 : i32
    return %c0_i32, %c0_i32_0 : i32, i32
  }
  func.func @transform_7(%arg0: i32) -> (i32, i32) {
    %c0_i32 = arith.constant 0 : i32
    %c0_i32_0 = arith.constant 0 : i32
    %c0_i32_1 = arith.constant 0 : i32
    return %c0_i32, %c0_i32_0 : i32, i32
  }
  func.func @transform_8(%arg0: i32) -> (i32, i32) {
    %c0_i32 = arith.constant 0 : i32
    %c0_i32_0 = arith.constant 0 : i32
    %c0_i32_1 = arith.constant 0 : i32
    return %c0_i32, %c0_i32_0 : i32, i32
  }
  func.func @transform_9(%arg0: i32) -> (i32, i32) {
    %c0_i32 = arith.constant 0 : i32
    %c0_i32_0 = arith.constant 0 : i32
    return %arg0, %c0_i32 : i32, i32
  }
}

</mosaic_0001>

<bundles_post_ra>
// kernel: tpu_custom_call.1
= control target key start
LH: loop header
LB: loop body
LE: loop exit
PB: predicated region body
PF: predicated region fallthrough
CT: control target
= control target key end

     0   :  { %s659_s0 = inlined_call_operand.vmem [shape: f32[8,4], index: 0, kind: input, shape index: {}]   ;;  %s660_s1 = inlined_call_operand.vmem [shape: bf16[4,128], index: 1, kind: input, shape index: {}]   ;;  %s661_s2 = inlined_call_operand.vmem [shape: f32[1,128], index: 2, kind: input, shape index: {}]   ;;  %s662_s3 = inlined_call_operand.hbm [shape: bf16[128,128], index: 3, kind: input, shape index: {}]   ;;  %s663_s4 = inlined_call_operand.vmem [shape: f32[1,128], index: 4, kind: input, shape index: {}]   ;;  %s664_s5 = inlined_call_operand.hbm [shape: bf16[128,128], index: 5, kind: input, shape index: {}]   ;;  %s665_s6 = inlined_call_operand.vmem [shape: f32[1,128], index: 6, kind: input, shape index: {}]   ;;  %s666_s7 = inlined_call_operand.vmem [shape: f32[1,128], index: 7, kind: input, shape index: {}]   ;;  %s667_s8 = inlined_call_operand.<no memory space> [shape: f32[1,1], index: 8, kind: input, shape index: {}]   ;;  %s668_s9 = inlined_call_operand.vmem [shape: f32[8,1], index: 9, kind: output, shape index: {}]  }
   0x1   :  { %v14_v0 = vstv %s667_s8 }
   0x2   :  { %15 = vst [vmem:[#allocation2] sm:$0x1] %v14_v0 }
   0x3   :  { %16 = vsyncpa [#allocation4], 0 }
   0x4   :  { %17 = vsyncpa [#allocation6], 0  ;;  %s532_s11 = smov [#allocation3]   ;;  %s484_s15 = scalar_lea.hbm %s662_s3, 1024 }
   0x5   :  { %s29_s12 = sshll.u32 %s532_s11, 4  ;;  %p485_p0 = scmp.ne.s32.totalorder %s662_s3, %s484_s15  ;;  %s30_s12 = int_to_ptr.vmem [resolvable:$true] %s29_s12 }
   0x6   :  { %p488_p1 = scmp.lt.u32.totalorder %s484_s15, %s662_s3 }
   0x8   :  { %p490_p2 = pnand %p488_p1, %p485_p0 }
   0xa   :  { %493 = shalt.err (!%p490_p2)
}
   0xb   :  { %s494_s8 = scalar_lea.vmem %s30_s12, 1024  ;;  %p499_p4 = scmp.lt.s32.totalorder %s30_s12, %s30_s12 }
   0xc   :  { %p495_p3 = scmp.ne.s32.totalorder %s30_s12, %s494_s8  ;;  %p500_p5 = scmp.lt.s32.totalorder %s494_s8, %s494_s8 }
   0xe   :  { %p501_p6 = por %p500_p5, %p499_p4 }
  0x10   :  { %p502_p7 = pnand %p501_p6, %p495_p3 }
  0x12   :  { %505 = shalt.err (!%p502_p7)
}
  0x13   :  { %s533_s20 = smov 64   ;;  %s534_s21 = smov 4  }
  0x14   :  { %35 = dma.hbm_to_vmem [thread:$0]  %s662_s3, 1024, %s30_s12, [#allocation4], %s533_s20, %s533_s20, %s534_s21  }
  0x15   :  { %s535_s24 = smov [#allocation5]   ;;  %s506_s28 = scalar_lea.hbm %s664_s5, 1024 }
  0x16   :  { %s43_s25 = sshll.u32 %s535_s24, 4  ;;  %p507_p8 = scmp.ne.s32.totalorder %s664_s5, %s506_s28  ;;  %s44_s25 = int_to_ptr.vmem [resolvable:$true] %s43_s25 }
  0x17   :  { %p510_p9 = scmp.lt.u32.totalorder %s506_s28, %s664_s5 }
  0x19   :  { %p512_p10 = pnand %p510_p9, %p507_p8 }
  0x1b   :  { %515 = shalt.err (!%p512_p10)
}
  0x1c   :  { %s516_s13 = scalar_lea.vmem %s44_s25, 1024  ;;  %p521_p12 = scmp.lt.s32.totalorder %s44_s25, %s44_s25 }
  0x1d   :  { %p517_p11 = scmp.ne.s32.totalorder %s44_s25, %s516_s13  ;;  %p522_p13 = scmp.lt.s32.totalorder %s516_s13, %s516_s13 }
  0x1f   :  { %p523_p0 = por %p522_p13, %p521_p12 }
  0x21   :  { %p524_p1 = pnand %p523_p0, %p517_p11 }
  0x23   :  { %527 = shalt.err (!%p524_p1)
}
  0x24   :  { %49 = dma.hbm_to_vmem [thread:$0]  %s664_s5, 1024, %s44_s25, [#allocation6], %s533_s20, %s533_s20, %s534_s21  }
  0x25   :  { %528 = dma.done.wait [#allocation4], 1024  }
  0x26   :  { %529 = vsyncadd [#allocation4], 4294966272 }
  0x27   :  { %530 = dma.done.wait [#allocation6], 1024  }
  0x28   :  { %531 = vsyncadd [#allocation6], 4294966272  ;;  %v536_v1 = vmov 0.0   ;;  %vm537_vm0 = vmmov 0   ;;  %vm77_vm1 = vcmask 1041408   ;;  %v63_v3 = vld [vmem:[%s659_s0] sm:$0xff] }
  0x29   :  { %416 = vmatprep.subr.bf16.mxu0 %v536_v1  ;;  %418 = vmatprep.mubr.msk.bf16.mxu0 %vm537_vm0, %v536_v1  ;;  %v64_v2 = vld [vmem:[%s660_s1] sm:$0x3]  ;;  %v66_v5 = vpack.c.bf16 %v63_v3, %v63_v3  ;;  %vm73_vm2 = vcmask 31744   ;;  %v469_v7 = vld [vmem:[#allocation3 + $0x8] sm:$0xff]   ;;  %v470_v8 = vld [vmem:[#allocation3 + $0x10] sm:$0xff]   ;;  %vm366_vm3 = vcmask 7168  }
  0x2a   :  { %422 = vmatprep.subr.bf16.mxu1 %v536_v1  ;;  %438 = vmatprep.mubr.msk.bf16.mxu1 %vm537_vm0, %v536_v1  ;;  %v79_v4 = vsel %vm77_vm1, %v64_v2, 0  ;;  %v468_v6 = vld [vmem:[#allocation3] sm:$0xff]   ;;  %v471_v9 = vld [vmem:[#allocation3 + $0x18] sm:$0xff]   ;;  %v473_v11 = vld [vmem:[#allocation3 + $0x28] sm:$0xff]  }
  0x2b   :  { %417 = vmatpush3.bf16.msra.mxu0 %v79_v4  ;;  %423 = vmatpush3.bf16.msra.mxu1 %v468_v6  ;;  %v472_v10 = vld [vmem:[#allocation3 + $0x20] sm:$0xff]   ;;  %v474_v12 = vld [vmem:[#allocation3 + $0x30] sm:$0xff]   ;;  %v475_v13 = vld [vmem:[#allocation3 + $0x38] sm:$0xff]  }
  0x2c   :  { %442 = vmatprep.subr.bf16.mxu0 %v536_v1  ;;  %424 = vmatprep.subr.bf16.mxu1 %v536_v1  ;;  %v476_v14 = vld [vmem:[#allocation5] sm:$0xff]   ;;  %v477_v15 = vld [vmem:[#allocation5 + $0x8] sm:$0xff]   ;;  %v478_v16 = vld [vmem:[#allocation5 + $0x10] sm:$0xff]  }
  0x2d   :  { %v479_v17 = vld [vmem:[#allocation5 + $0x18] sm:$0xff]   ;;  %v480_v18 = vld [vmem:[#allocation5 + $0x20] sm:$0xff]   ;;  %v481_v19 = vld [vmem:[#allocation5 + $0x28] sm:$0xff]  }
  0x2e   :  { %419 = vmatmul.mubr.msk.bf16.vlgmr.msra.gmra.mrb[0].mxu0 %vm73_vm2, %v66_v5  ;;  %v374_v20 = vld [vmem:[%s661_s2] ss:$0 sm:$0xff]  ;;  %v482_v28 = vld [vmem:[#allocation5 + $0x30] sm:$0xff]  }
  0x2f   :  { %458 = vmatprep.mubr.msk.bf16.mxu0 %vm537_vm0, %v536_v1  ;;  %425 = vmatpush3.bf16.msra.mxu1 %v469_v7  ;;  %v483_v29 = vld [vmem:[#allocation5 + $0x38] sm:$0xff]  }
  0x30   :  { %426 = vmatprep.subr.bf16.mxu1 %v536_v1  ;;  %443 = vmatpush3.bf16.msra.mxu0 %v476_v14  ;;  %v376_v30 = vld [vmem:[%s663_s4] ss:$0 sm:$0xff] }
  0x31   :  { %444 = vmatprep.subr.bf16.mxu0 %v536_v1  ;;  %v385_v38 = vld [vmem:[%s665_s6] ss:$0 sm:$0xff] }
  0x32   :  { %v394_v43 = vld [vmem:[%s666_s7] ss:$0 sm:$0xff] }
  0x33   :  { %427 = vmatpush3.bf16.msra.mxu1 %v470_v8  ;;  %v395_v47 = vld [vmem:[#allocation2] ss:$0 sm:$0xff] }
  0x34   :  { %428 = vmatprep.subr.bf16.mxu1 %v536_v1  ;;  %445 = vmatpush3.bf16.msra.mxu0 %v477_v15 }
  0x35   :  { %446 = vmatprep.subr.bf16.mxu0 %v536_v1 }
  0x37   :  { %429 = vmatpush3.bf16.msra.mxu1 %v471_v9 }
  0x38   :  { %430 = vmatprep.subr.bf16.mxu1 %v536_v1  ;;  %447 = vmatpush3.bf16.msra.mxu0 %v478_v16 }
  0x39   :  { %448 = vmatprep.subr.bf16.mxu0 %v536_v1 }
  0x3b   :  { %431 = vmatpush3.bf16.msra.mxu1 %v472_v10 }
  0x3c   :  { %432 = vmatprep.subr.bf16.mxu1 %v536_v1  ;;  %449 = vmatpush3.bf16.msra.mxu0 %v479_v17 }
  0x3d   :  { %450 = vmatprep.subr.bf16.mxu0 %v536_v1 }
  0x3f   :  { %433 = vmatpush3.bf16.msra.mxu1 %v473_v11 }
  0x40   :  { %434 = vmatprep.subr.bf16.mxu1 %v536_v1  ;;  %451 = vmatpush3.bf16.msra.mxu0 %v480_v18 }
  0x41   :  { %452 = vmatprep.subr.bf16.mxu0 %v536_v1 }
  0x43   :  { %435 = vmatpush3.bf16.msra.mxu1 %v474_v12 }
  0x44   :  { %436 = vmatprep.subr.bf16.mxu1 %v536_v1  ;;  %453 = vmatpush3.bf16.msra.mxu0 %v481_v19 }
  0x45   :  { %454 = vmatprep.subr.bf16.mxu0 %v536_v1 }
  0x47   :  { %437 = vmatpush3.bf16.msra.mxu1 %v475_v13 }
  0x48   :  { %455 = vmatpush3.bf16.msra.mxu0 %v482_v28 }
  0x49   :  { %456 = vmatprep.subr.bf16.mxu0 %v536_v1 }
  0x4c   :  { %457 = vmatpush3.bf16.msra.mxu0 %v483_v29 }
 0x101   :  { %v115_v21 = vpop.f32.mrb[0].mxu0 }
 0x102   :  { %v116_v22 = vadd.f32 %v374_v20, %v115_v21  ;;  %v420_v23 = vpop.f32.mrb[1].mxu0 }
 0x103   :  { %v118_v24 = vpop.f32.mrb[2].mxu0 }
 0x104   :  { %v121_v25 = vmax.f32 %v116_v22, 0.0  ;;  %v421_v26 = vpop.f32.mrb[3].mxu0 }
 0x106   :  { %v139_v27 = vpack.c.bf16 %v121_v25, %v121_v25 }
 0x108   :  { %439 = vmatmul.mubr.bf16.vlgmr.msra.gmra.mrb[0].mxu1 %v139_v27 }
 0x1db   :  { %v228_v31 = vpop.f32.mrb[0].mxu1 }
 0x1dc   :  { %v229_v32 = vadd.f32 %v376_v30, %v228_v31  ;;  %v440_v33 = vpop.f32.mrb[1].mxu1 }
 0x1dd   :  { %v231_v34 = vpop.f32.mrb[2].mxu1 }
 0x1de   :  { %v234_v35 = vmax.f32 %v229_v32, 0.0  ;;  %v441_v36 = vpop.f32.mrb[3].mxu1 }
 0x1e0   :  { %v252_v37 = vpack.c.bf16 %v234_v35, %v234_v35 }
 0x1e2   :  { %459 = vmatmul.mubr.bf16.vlgmr.msra.gmra.mrb[4].mxu0 %v252_v37 }
 0x2b5   :  { %v341_v39 = vpop.f32.mrb[4].mxu0 }
 0x2b6   :  { %v342_v40 = vadd.f32 %v385_v38, %v341_v39  ;;  %v460_v41 = vpop.f32.mrb[5].mxu0 }
 0x2b7   :  { %v344_v42 = vpop.f32.mrb[6].mxu0 }
 0x2b8   :  { %v347_v44 = vmax.f32 %v342_v40, 0.0  ;;  %v461_v45 = vpop.f32.mrb[7].mxu0 }
 0x2ba   :  { %v355_v46 = vmul.f32 %v394_v43, %v347_v44 }
 0x2bc   :  { %356 = vadd.xlane.f32.xlu0 %v355_v46 }
 0x349   :  { %v357_v48 = vpop.xlane.xlu0 %356 }
 0x34a   :  { %v365_v49 = vadd.f32 %v395_v47, %v357_v48 }
 0x34c   :  { %367 = vst.msk [vmem:[%s668_s9] sm:$0xff] %vm366_vm3, %v365_v49 }
 0x34d   :  { %372 = vsyncpa [#allocation4], 1 }
 0x34e   :  { %373 = vsyncpa [#allocation6], 1 }

</bundles_post_ra>
